<compile_context>
chip_gen: v6e
topology: v6e:2x2x1
jax: 0.10.0
libtpu: 0.0.40
codegen_flags: <defaults>
</compile_context>

<pallas_src>
import jax
import jax.numpy as jnp
from jax.experimental import pallas as pl
from jax.experimental.pallas import tpu as pltpu

GCF_CH = 128   # hidden / output channel count fixed by the module
BN_EPS = 1e-5


# ----------------------------------------------------------------------------
# Kernel 1: tiny gate kernel (runs once per call) -- conv1+ReLU, conv2+sigmoid
# on the globally pooled `down` features.
# ----------------------------------------------------------------------------
def gcf_gate_kernel(dmean_ref, w1t_ref, b1_ref, w2t_ref, b2_ref, gate_ref):
    # dmean_ref : (N, C_down)   globally averaged `down` features
    # w1t_ref   : (C_down, 128) conv1 weight, transposed;   b1_ref: (1, 128)
    # w2t_ref   : (128, 128)    conv2 weight, transposed;   b2_ref: (1, 128)
    # gate_ref  : (N, 128)
    g = jnp.dot(dmean_ref[...], w1t_ref[...],
                preferred_element_type=jnp.float32) + b1_ref[...]
    g = jnp.maximum(g, 0.0)
    g = jnp.dot(g, w2t_ref[...],
                preferred_element_type=jnp.float32) + b2_ref[...]
    gate_ref[...] = jax.nn.sigmoid(g)


# ----------------------------------------------------------------------------
# Kernel 2: streaming kernel -- conv0 (+ folded BN) + ReLU, scaled by the
# precomputed per-channel gate.  One (batch, spatial-tile) grid point per call.
# ----------------------------------------------------------------------------
def gcf_kernel(left_ref, gate_ref, w0_ref, b0_ref, out_ref):
    # left_ref : (1, C_left, THW)   one batch element, one spatial tile
    # gate_ref : (1, 128, 1)        precomputed sigmoid gate for this batch elem
    # w0_ref   : (128, C_left)      conv0 weight with BN folded in
    # b0_ref   : (128, 1)           conv0 bias  with BN folded in
    # out_ref  : (1, 128, THW)
    l = left_ref[0]                                            # (C_left, THW)
    feat = jnp.dot(w0_ref[...], l, preferred_element_type=jnp.float32)
    feat = jnp.maximum(feat + b0_ref[...], 0.0)                # (128, THW)
    out_ref[0] = (feat * gate_ref[0]).astype(out_ref.dtype)    # (128,1) bcast


# ----------------------------------------------------------------------------
# Wrapper
# ----------------------------------------------------------------------------
def _pick_spatial_tile(hw_pad, n_batch, cap=8192):
    """Largest 128-multiple tile dividing hw_pad, capped for VMEM; force >=2
    tiles when batch==1 so v7x's second TensorCore gets work."""
    if n_batch == 1 and hw_pad >= 256:
        cap = min(cap, hw_pad // 2)
    best = 128
    for t in range(128, hw_pad + 1, 128):
        if t > cap:
            break
        if hw_pad % t == 0:
            best = t
    return best


def gcf_forward(left, down, w0, b0, bn_gamma, bn_beta, bn_mean, bn_var,
                w1, b1, w2, b2, eps=BN_EPS, out_dtype=jnp.float32):
    """left: (N, C_left, H, W); down: (N, C_down, H2, W2).  Returns (N, 128, H, W)."""
    N, Cl, H, W = left.shape
    Nd, Cd, H2, W2 = down.shape
    assert Nd == N
    OUT = w0.shape[0]
    HW = H * W

    # Fold inference-mode BatchNorm into conv0 (exact linear algebra at f32).
    # TODO(synk): training-mode BatchNorm (batch statistics) is not implemented;
    # eval/running-stats semantics (standard deployment form) are used.
    scale = (bn_gamma.astype(jnp.float32)
             / jnp.sqrt(bn_var.astype(jnp.float32) + eps))
    w0f = w0.astype(jnp.float32) * scale[:, None]                       # (OUT, Cl)
    b0f = (scale * (b0.astype(jnp.float32) - bn_mean.astype(jnp.float32))
           + bn_beta.astype(jnp.float32)).reshape(OUT, 1)               # (OUT, 1)

    # ---- down branch (hoisted): global average pool + tiny gate kernel ------
    dmean = jnp.mean(down.astype(jnp.float32).reshape(N, Cd, H2 * W2), axis=2)  # (N, Cd)
    gate = pl.pallas_call(
        gcf_gate_kernel,
        out_shape=jax.ShapeDtypeStruct((N, OUT), jnp.float32),
    )(dmean,
      jnp.transpose(w1.astype(jnp.float32)),   # (Cd, OUT)
      b1.astype(jnp.float32).reshape(1, OUT),
      jnp.transpose(w2.astype(jnp.float32)),   # (OUT, OUT)
      b2.astype(jnp.float32).reshape(1, OUT))
    gate = gate.reshape(N, OUT, 1)

    # ---- left branch: streaming matmul + per-channel scale ------------------
    # NCHW -> (N, C, HW): reshape only, no transpose.  Zero-pad HW to a
    # multiple of 128 so all tiles are lane-dense (padded lanes sliced off).
    left_f = left.astype(jnp.float32).reshape(N, Cl, HW)
    hw_pad = ((HW + 127) // 128) * 128
    if hw_pad != HW:
        left_f = jnp.pad(left_f, ((0, 0), (0, 0), (0, hw_pad - HW)))

    thw = _pick_spatial_tile(hw_pad, N)
    n_hw = hw_pad // thw

    out = pl.pallas_call(
        gcf_kernel,
        out_shape=jax.ShapeDtypeStruct((N, OUT, hw_pad), out_dtype),
        grid=(N, n_hw),
        in_specs=[
            pl.BlockSpec((1, Cl, thw), lambda n, j: (n, 0, j)),
            pl.BlockSpec((1, OUT, 1), lambda n, j: (n, 0, 0)),
            pl.BlockSpec((OUT, Cl), lambda n, j: (0, 0)),
            pl.BlockSpec((OUT, 1), lambda n, j: (0, 0)),
        ],
        out_specs=pl.BlockSpec((1, OUT, thw), lambda n, j: (n, 0, j)),
        compiler_params=pltpu.CompilerParams(
            dimension_semantics=("parallel", "parallel"),
            vmem_limit_bytes=32 * 1024 * 1024,
        ),
    )(left_f, gate, w0f, b0f)

    if hw_pad != HW:
        out = out[:, :, :HW]
    return out.reshape(N, OUT, H, W)


# ----------------------------------------------------------------------------
# Pure-JAX reference (same math, used only to validate the kernel)
# ----------------------------------------------------------------------------
def gcf_reference(left, down, w0, b0, bn_gamma, bn_beta, bn_mean, bn_var,
                  w1, b1, w2, b2, eps=BN_EPS):
    y = jnp.einsum("oc,nchw->nohw", w0, left) + b0[None, :, None, None]
    y = (y - bn_mean[None, :, None, None]) / jnp.sqrt(bn_var + eps)[None, :, None, None]
    y = y * bn_gamma[None, :, None, None] + bn_beta[None, :, None, None]
    y = jnp.maximum(y, 0.0)

    d = jnp.mean(down, axis=(2, 3), keepdims=True)
    d = jnp.einsum("oc,nchw->nohw", w1, d) + b1[None, :, None, None]
    d = jnp.maximum(d, 0.0)
    d = jnp.einsum("oc,nchw->nohw", w2, d) + b2[None, :, None, None]
    d = jax.nn.sigmoid(d)
    return y * d


# ----------------------------------------------------------------------------
if __name__ == "__main__":
    # Small shapes: batch=2, in_channel_left=4 @ 16x16, in_channel_down=6 @ 8x8.
    N, Cl, H, W = 2, 4, 16, 16
    Cd, H2, W2 = 6, 8, 8

    key = jax.random.PRNGKey(0)
    ks = jax.random.split(key, 12)

    left = jax.random.normal(ks[0], (N, Cl, H, W), dtype=jnp.float32)
    down = jax.random.normal(ks[1], (N, Cd, H2, W2), dtype=jnp.float32)

    w0 = 0.3 * jax.random.normal(ks[2], (GCF_CH, Cl), dtype=jnp.float32)      # conv0
    b0 = 0.1 * jax.random.normal(ks[3], (GCF_CH,), dtype=jnp.float32)
    bn_gamma = 1.0 + 0.1 * jax.random.normal(ks[4], (GCF_CH,), dtype=jnp.float32)
    bn_beta = 0.1 * jax.random.normal(ks[5], (GCF_CH,), dtype=jnp.float32)
    bn_mean = 0.1 * jax.random.normal(ks[6], (GCF_CH,), dtype=jnp.float32)
    bn_var = 0.5 + 0.5 * jnp.abs(jax.random.normal(ks[7], (GCF_CH,), dtype=jnp.float32))
    w1 = 0.3 * jax.random.normal(ks[8], (GCF_CH, Cd), dtype=jnp.float32)      # conv1
    b1 = 0.1 * jax.random.normal(ks[9], (GCF_CH,), dtype=jnp.float32)
    w2 = 0.2 * jax.random.normal(ks[10], (GCF_CH, GCF_CH), dtype=jnp.float32)  # conv2
    b2 = 0.1 * jax.random.normal(ks[11], (GCF_CH,), dtype=jnp.float32)

    out = gcf_forward(left, down, w0, b0, bn_gamma, bn_beta, bn_mean, bn_var,
                      w1, b1, w2, b2)
    out = jax.block_until_ready(out)

    ref = gcf_reference(left, down, w0, b0, bn_gamma, bn_beta, bn_mean, bn_var,
                        w1, b1, w2, b2)
    assert out.shape == (N, GCF_CH, H, W), out.shape
    max_err = float(jnp.max(jnp.abs(out - ref)))
    assert jnp.allclose(out, ref, atol=1e-4, rtol=1e-4), max_err

    print("KERNEL_OK")
</pallas_src>

<mosaic_0001>
module attributes {stable_mosaic.version = 11 : i64} {
  func.func @gcf_gate_kernel(%arg0: memref<2x6xf32, #tpu.memory_space<vmem>>, %arg1: memref<6x128xf32, #tpu.memory_space<vmem>>, %arg2: memref<1x128xf32, #tpu.memory_space<vmem>>, %arg3: memref<128x128xf32, #tpu.memory_space<vmem>>, %arg4: memref<1x128xf32, #tpu.memory_space<vmem>>, %arg5: memref<2x128xf32, #tpu.memory_space<vmem>>) attributes {dimension_semantics = [], scalar_prefetch = 0 : i64, scratch_operands = 0 : i64, tpu.core_type = #tpu.core_type<tc>} {
    %c0 = arith.constant 0 : index
    %c0_0 = arith.constant 0 : index
    %0 = vector.load %arg0[%c0, %c0_0] : memref<2x6xf32, #tpu.memory_space<vmem>>, vector<2x6xf32>
    %c0_1 = arith.constant 0 : index
    %c0_2 = arith.constant 0 : index
    %1 = vector.load %arg1[%c0_1, %c0_2] : memref<6x128xf32, #tpu.memory_space<vmem>>, vector<6x128xf32>
    %cst = arith.constant dense<0.000000e+00> : vector<2x128xf32>
    %2 = tpu.matmul %0, %1, %cst {dimension_numbers = #tpu.dot_dimension_numbers<[1], [0], [0], [1], [0, 0, 1, 1], [], []>} : vector<2x6xf32>, vector<6x128xf32>, vector<2x128xf32> -> vector<2x128xf32>
    %c0_3 = arith.constant 0 : index
    %c0_4 = arith.constant 0 : index
    %3 = vector.load %arg2[%c0_3, %c0_4] : memref<1x128xf32, #tpu.memory_space<vmem>>, vector<1x128xf32>
    %4 = vector.broadcast %3 : vector<1x128xf32> to vector<2x128xf32>
    %5 = arith.addf %2, %4 : vector<2x128xf32>
    %cst_5 = arith.constant 0.000000e+00 : f32
    %6 = vector.broadcast %cst_5 : f32 to vector<2x128xf32>
    %7 = arith.maximumf %5, %6 : vector<2x128xf32>
    %c0_6 = arith.constant 0 : index
    %c0_7 = arith.constant 0 : index
    %8 = vector.load %arg3[%c0_6, %c0_7] : memref<128x128xf32, #tpu.memory_space<vmem>>, vector<128x128xf32>
    %cst_8 = arith.constant dense<0.000000e+00> : vector<2x128xf32>
    %9 = tpu.matmul %7, %8, %cst_8 {dimension_numbers = #tpu.dot_dimension_numbers<[1], [0], [0], [1], [0, 0, 1, 1], [], []>} : vector<2x128xf32>, vector<128x128xf32>, vector<2x128xf32> -> vector<2x128xf32>
    %c0_9 = arith.constant 0 : index
    %c0_10 = arith.constant 0 : index
    %10 = vector.load %arg4[%c0_9, %c0_10] : memref<1x128xf32, #tpu.memory_space<vmem>>, vector<1x128xf32>
    %11 = vector.broadcast %10 : vector<1x128xf32> to vector<2x128xf32>
    %12 = arith.addf %9, %11 : vector<2x128xf32>
    %13 = arith.negf %12 : vector<2x128xf32>
    %14 = math.exp %13 : vector<2x128xf32>
    %cst_11 = arith.constant 1.000000e+00 : f32
    %15 = vector.broadcast %cst_11 : f32 to vector<2x128xf32>
    %16 = arith.addf %15, %14 : vector<2x128xf32>
    %17 = arith.divf %15, %16 : vector<2x128xf32>
    %c0_12 = arith.constant 0 : index
    %c0_13 = arith.constant 0 : index
    %18 = vector.load %arg5[%c0_12, %c0_13] : memref<2x128xf32, #tpu.memory_space<vmem>>, vector<2x128xf32>
    tpu.vector_store %arg5[%c0_12, %c0_13], %17 {strides = array<i32>} : memref<2x128xf32, #tpu.memory_space<vmem>>, vector<2x128xf32>,
    return
  }
}

</mosaic_0001>

<bundles_post_ra>
// kernel: tpu_custom_call.1
= control target key start
LH: loop header
LB: loop body
LE: loop exit
PB: predicated region body
PF: predicated region fallthrough
CT: control target
= control target key end

     0   :  { %10 = vsyncpa [#allocation3], 0  ;;  %s480_s0 = inlined_call_operand.hbm [shape: f32[2,6], index: 0, kind: input, shape index: {}]   ;;  %s481_s1 = inlined_call_operand.hbm [shape: f32[6,128], index: 1, kind: input, shape index: {}]   ;;  %s482_s2 = inlined_call_operand.vmem [shape: f32[1,128], index: 2, kind: input, shape index: {}]   ;;  %s483_s3 = inlined_call_operand.hbm [shape: f32[128,128], index: 3, kind: input, shape index: {}]   ;;  %s484_s4 = inlined_call_operand.vmem [shape: f32[1,128], index: 4, kind: input, shape index: {}]   ;;  %s485_s5 = inlined_call_operand.hbm [shape: f32[2,128], index: 5, kind: output, shape index: {}]  }
   0x1   :  { %11 = vsyncpa [#allocation6], 0 }
   0x2   :  { %12 = vsyncpa [#allocation4], 0  ;;  %s424_s18 = smov [#allocation5]   ;;  %s425_s20 = smov [#allocation2]  }
   0x3   :  { %s29_s19 = sshll.u32 %s424_s18, 4  ;;  %s19_s21 = sshll.u32 %s425_s20, 4  ;;  %s30_s19 = int_to_ptr.vmem [resolvable:$true] %s29_s19  ;;  %s20_s21 = int_to_ptr.vmem [resolvable:$true] %s19_s21 }
   0x4   :  { %s346_s22 = scalar_lea.vmem %s30_s19, 128  ;;  %p351_p1 = scmp.lt.s32.totalorder %s30_s19, %s30_s19 }
   0x5   :  { %p347_p0 = scmp.ne.s32.totalorder %s30_s19, %s346_s22  ;;  %p352_p2 = scmp.lt.s32.totalorder %s346_s22, %s346_s22 }
   0x7   :  { %p353_p3 = por %p352_p2, %p351_p1 }
   0x9   :  { %p354_p4 = pnand %p353_p3, %p347_p0 }
   0xb   :  { %357 = shalt.err (!%p354_p4)
}
   0xc   :  { %32 = dma.hbm_to_vmem [thread:$0]  %s481_s1, 128, %s30_s19, [#allocation6]  }
   0xd   :  { %s366_s25 = scalar_lea.vmem %s20_s21, 32  ;;  %p371_p6 = scmp.lt.s32.totalorder %s20_s21, %s20_s21 }
   0xe   :  { %p367_p5 = scmp.ne.s32.totalorder %s20_s21, %s366_s25  ;;  %p372_p7 = scmp.lt.s32.totalorder %s366_s25, %s366_s25 }
  0x10   :  { %p373_p8 = por %p372_p7, %p371_p6 }
  0x12   :  { %p374_p9 = pnand %p373_p8, %p367_p5 }
  0x14   :  { %377 = shalt.err (!%p374_p9)
}
  0x15   :  { %22 = dma.hbm_to_vmem [thread:$0]  %s480_s0, 32, %s20_s21, [#allocation3]  }
  0x16   :  { %s426_s28 = smov [#allocation7]  }
  0x17   :  { %s40_s29 = sshll.u32 %s426_s28, 4  ;;  %s41_s29 = int_to_ptr.vmem [resolvable:$true] %s40_s29 }
  0x18   :  { %s386_s30 = scalar_lea.vmem %s41_s29, 2048  ;;  %p391_p11 = scmp.lt.s32.totalorder %s41_s29, %s41_s29 }
  0x19   :  { %p387_p10 = scmp.ne.s32.totalorder %s41_s29, %s386_s30  ;;  %p392_p12 = scmp.lt.s32.totalorder %s386_s30, %s386_s30 }
  0x1b   :  { %p393_p13 = por %p392_p12, %p391_p11 }
  0x1d   :  { %p394_p0 = pnand %p393_p13, %p387_p10 }
  0x1f   :  { %397 = shalt.err (!%p394_p0)
}
  0x20   :  { %s427_s1 = smov 128   ;;  %s428_s6 = smov 8  }
  0x21   :  { %46 = dma.hbm_to_vmem [thread:$0]  %s483_s3, 2048, %s41_s29, [#allocation6], %s427_s1, %s427_s1, %s428_s6  }
  0x22   :  { %418 = dma.done.wait [#allocation3], 32  }
  0x23   :  { %419 = vsyncadd [#allocation3], 4294967264 }
  0x24   :  { %420 = dma.done.wait [#allocation6], 2176  }
  0x25   :  { %421 = vsyncadd [#allocation6], 4294965120  ;;  %v429_v0 = vmov 0.0   ;;  %vm430_vm0 = vmmov 0   ;;  %vm71_vm1 = vcmask 1045504   ;;  %vm67_vm2 = vcmask 48128  }
  0x26   :  { %286 = vmatprep.subr.mxu0 %v429_v0  ;;  %288 = vmatprep.mubr.msk.f32.mxu0 %vm430_vm0, %v429_v0  ;;  %v59_v1 = vld [vmem:[#allocation5] sm:$0x3f]  ;;  %v58_v2 = vld [vmem:[#allocation2] sm:$0x3]  ;;  %v159_v5 = vld [vmem:[#allocation7 + $0x68] sm:$0xff]  ;;  %s431_s11 = smov [#allocation8]  }
  0x27   :  { %291 = vmatprep.subr.mxu1 %v429_v0  ;;  %323 = vmatprep.mubr.msk.f32.mxu1 %vm430_vm0, %v429_v0  ;;  %v161_v3 = vld [vmem:[#allocation7 + $0x78] sm:$0xff]  ;;  %v160_v4 = vld [vmem:[#allocation7 + $0x70] sm:$0xff]  ;;  %v158_v6 = vld [vmem:[#allocation7 + $0x60] sm:$0xff]  ;;  %s252_s12 = sshll.u32 %s431_s11, 4  ;;  %s253_s12 = int_to_ptr.vmem [resolvable:$true] %s252_s12 }
  0x28   :  { %287 = vmatpush3.msk.msra.mxu0 %vm71_vm1, %v59_v1  ;;  %292 = vmatpush3.msra.mxu1 %v161_v3  ;;  %v157_v7 = vld [vmem:[#allocation7 + $0x58] sm:$0xff]  ;;  %v156_v8 = vld [vmem:[#allocation7 + $0x50] sm:$0xff]  ;;  %v155_v9 = vld [vmem:[#allocation7 + $0x48] sm:$0xff]  ;;  %p403_p2 = scmp.lt.s32.totalorder %s253_s12, %s253_s12 }
  0x29   :  { %289 = vmatmul.mubr.msk.f32.vlgmr.msra.gmra.mxu0 %vm67_vm2, %v58_v2  ;;  %293 = vmatprep.subr.mxu1 %v429_v0  ;;  %v154_v10 = vld [vmem:[#allocation7 + $0x40] sm:$0xff]  ;;  %v153_v11 = vld [vmem:[#allocation7 + $0x38] sm:$0xff]  ;;  %v152_v12 = vld [vmem:[#allocation7 + $0x30] sm:$0xff] }
  0x2a   :  { %294 = vmatpush3.msra.mxu1 %v160_v4  ;;  %v151_v13 = vld [vmem:[#allocation7 + $0x28] sm:$0xff]  ;;  %v150_v14 = vld [vmem:[#allocation7 + $0x20] sm:$0xff]  ;;  %v149_v15 = vld [vmem:[#allocation7 + $0x18] sm:$0xff] }
  0x2b   :  { %295 = vmatprep.subr.mxu1 %v429_v0  ;;  %v148_v16 = vld [vmem:[#allocation7 + $0x10] sm:$0xff]  ;;  %v147_v17 = vld [vmem:[#allocation7 + $0x8] sm:$0xff]  ;;  %v146_v18 = vld [vmem:[#allocation7] sm:$0xff] }
  0x2c   :  { %296 = vmatpush3.msra.mxu1 %v159_v5  ;;  %v262_v19 = vld [vmem:[%s482_s2] ss:$0 sm:$0xff]  ;;  %s398_s2 = scalar_lea.vmem %s253_s12, 32 }
  0x2d   :  { %297 = vmatprep.subr.mxu1 %v429_v0  ;;  %v265_v24 = vld [vmem:[%s484_s4] ss:$0 sm:$0xff]  ;;  %p399_p1 = scmp.ne.s32.totalorder %s253_s12, %s398_s2  ;;  %p404_p3 = scmp.lt.s32.totalorder %s398_s2, %s398_s2 }
  0x2e   :  { %298 = vmatpush3.msra.mxu1 %v158_v6 }
  0x2f   :  { %299 = vmatprep.subr.mxu1 %v429_v0  ;;  %p405_p4 = por %p404_p3, %p403_p2 }
  0x30   :  { %300 = vmatpush3.msra.mxu1 %v157_v7 }
  0x31   :  { %301 = vmatprep.subr.mxu1 %v429_v0  ;;  %p406_p5 = pnand %p405_p4, %p399_p1 }
  0x32   :  { %302 = vmatpush3.msra.mxu1 %v156_v8 }
  0x33   :  { %303 = vmatprep.subr.mxu1 %v429_v0 }
  0x34   :  { %304 = vmatpush3.msra.mxu1 %v155_v9 }
  0x35   :  { %305 = vmatprep.subr.mxu1 %v429_v0 }
  0x36   :  { %306 = vmatpush3.msra.mxu1 %v154_v10 }
  0x37   :  { %307 = vmatprep.subr.mxu1 %v429_v0 }
  0x38   :  { %308 = vmatpush3.msra.mxu1 %v153_v11 }
  0x39   :  { %309 = vmatprep.subr.mxu1 %v429_v0 }
  0x3a   :  { %310 = vmatpush3.msra.mxu1 %v152_v12 }
  0x3b   :  { %311 = vmatprep.subr.mxu1 %v429_v0 }
  0x3c   :  { %312 = vmatpush3.msra.mxu1 %v151_v13 }
  0x3d   :  { %313 = vmatprep.subr.mxu1 %v429_v0 }
  0x3e   :  { %314 = vmatpush3.msra.mxu1 %v150_v14 }
  0x3f   :  { %315 = vmatprep.subr.mxu1 %v429_v0 }
  0x40   :  { %316 = vmatpush3.msra.mxu1 %v149_v15 }
  0x41   :  { %317 = vmatprep.subr.mxu1 %v429_v0 }
  0x42   :  { %318 = vmatpush3.msra.mxu1 %v148_v16 }
  0x43   :  { %319 = vmatprep.subr.mxu1 %v429_v0 }
  0x44   :  { %320 = vmatpush3.msra.mxu1 %v147_v17 }
  0x45   :  { %321 = vmatprep.subr.mxu1 %v429_v0 }
  0x46   :  { %322 = vmatpush3.msra.mxu1 %v146_v18 }
  0xe9   :  { %v141_v20 = vpop.f32.mrf.mxu0 }
  0xea   :  { %v142_v21 = vadd.f32 %v262_v19, %v141_v20 }
  0xeb   :  { %v290_v22 = vpop.f32.mrf.mxu0 }
  0xec   :  { %v145_v23 = vmax.f32 %v142_v21, 0.0 }
  0xee   :  { %324 = vmatmul.mubr.f32.vlgmr.msra.gmra.mxu1 %v145_v23 }
 0x1ae   :  { %v235_v25 = vpop.f32.mrf.mxu1 }
 0x1af   :  { %v236_v26 = vadd.f32 %v265_v24, %v235_v25 }
 0x1b0   :  { %v325_v27 = vpop.f32.mrf.mxu1 }
 0x1b1   :  { %v266_v28 = vmul.f32 -1.442695, %v236_v26 }
 0x1b3   :  { %334 = vpow2.f32 %v266_v28 }
 0x1c0   :  { %v335_v29 = vpop.eup %334 }
 0x1c1   :  { %v242_v30 = vadd.f32 1.0, %v335_v29 }
 0x1c3   :  { %336 = vrcp.f32 %v242_v30 }
 0x1d0   :  { %v337_v31 = vpop.eup %336 }
 0x1d1   :  { %245 = vst [vmem:[#allocation8] sm:$0x3] %v337_v31 }
 0x1d2   :  { %409 = shalt.err (!%p406_p5)
}
 0x1d3   :  { %255 = dma.vmem_to_hbm [thread:$0]  %s253_s12, 32, %s485_s5, [#allocation4]  }
 0x1d4   :  { %422 = dma.done.wait [#allocation4], 32  }
 0x1d5   :  { %423 = vsyncadd [#allocation4], 4294967264 }
 0x1d6   :  { %259 = vsyncpa [#allocation3], 1 }
 0x1d7   :  { %260 = vsyncpa [#allocation6], 1 }
 0x1d8   :  { %261 = vsyncpa [#allocation4], 1 }

</bundles_post_ra>
